<compile_context>
chip_gen: v7x
topology: tpu7x:2x2x1
jax: 0.10.0
libtpu: 0.0.40
codegen_flags: <defaults>
</compile_context>

<pallas_src>
import inspect

import jax
import jax.numpy as jnp
from jax.experimental import pallas as pl
from jax.experimental.pallas import tpu as pltpu


def _round_up(x, m):
    return (x + m - 1) // m * m


def _pad_to(x, shape):
    pads = [(0, s - d) for d, s in zip(x.shape, shape)]
    if all(p == (0, 0) for p in pads):
        return x
    return jnp.pad(x, pads)


# ---------------------------------------------------------------------------
# Pallas kernel: full 3-layer MLP for one batch tile, entirely in VMEM.
# x arrives in caller dtype (f32) and is cast to bf16 in-kernel; weights arrive
# as bf16 [in, out]; biases as f32 [1, out]; MXU accumulation in f32.
# ---------------------------------------------------------------------------
def _r3m_mlp_kernel(x_ref, w1_ref, b1_ref, w2_ref, b2_ref, w3_ref, b3_ref, o_ref):
    bf16, f32 = jnp.bfloat16, jnp.float32

    x = x_ref[...].astype(bf16)  # per-tile cast (no separate HBM pass)

    # Layer 1: Linear + ReLU
    h1 = jnp.dot(x, w1_ref[...], preferred_element_type=f32) + b1_ref[...]
    h1 = jnp.maximum(h1, 0.0)

    # Layer 2: Linear + ReLU
    h2 = jnp.dot(h1.astype(bf16), w2_ref[...], preferred_element_type=f32) + b2_ref[...]
    h2 = jnp.maximum(h2, 0.0)

    # Output layer: Linear (no activation), lane-dense (O padded to 128) store.
    out = jnp.dot(h2.astype(bf16), w3_ref[...], preferred_element_type=f32) + b3_ref[...]
    o_ref[...] = out.astype(o_ref.dtype)


def _weight_pipeline_kwargs():
    """Single-buffer resident weights if this JAX supports pipeline_mode=Buffered."""
    if not hasattr(pl, "Buffered"):
        return {}
    try:
        params = inspect.signature(pl.BlockSpec.__init__).parameters
        if "pipeline_mode" not in params:
            return {}
    except (TypeError, ValueError):
        return {}
    return dict(pipeline_mode=pl.Buffered(1))


def _choose_batch_tile(B_p, batch_tile):
    """Pick an MXU-aligned batch tile; guarantee >= 2 grid steps for B_p > 128."""
    if B_p <= 128:
        return B_p  # single small step; splitting tiny batches only adds overhead
    steps = max(2, pl.cdiv(B_p, batch_tile))        # >= 2 so v7x's 2nd TC has work
    bt = _round_up(pl.cdiv(B_p, steps), 128)        # 128-multiples (MXU aligned)
    return min(bt, batch_tile)


def _build_pallas_fn(bt, B_p, D, H1, H2, O_p, x_itemsize):
    grid = (pl.cdiv(B_p, bt),)

    wb_kwargs = _weight_pipeline_kwargs()

    def const(shape):
        # Constant block index across the grid -> weights stay resident in VMEM.
        return pl.BlockSpec(shape, lambda i: (0, 0), **wb_kwargs)

    # Advisory cost for XLA scheduling.
    flops = 2 * B_p * (D * H1 + H1 * H2 + H2 * O_p)
    bytes_accessed = (
        B_p * D * x_itemsize                        # x (caller dtype)
        + (D * H1 + H1 * H2 + H2 * O_p) * 2         # weights (bf16)
        + (H1 + H2 + O_p) * 4                       # biases (f32)
        + B_p * O_p * 4                             # output (f32)
    )

    # Rough per-step VMEM working set; only raise the scoped limit when needed,
    # and never above 48 MiB (v7x physical VMEM per TC is 64 MiB).
    vmem_bytes = (
        2 * bt * D * x_itemsize                     # double-buffered x tiles
        + 2 * bt * O_p * 4                          # double-buffered out tiles
        + bt * (H1 + H2) * 4                        # h1 / h2 f32 intermediates
        + (D * H1 + H1 * H2 + H2 * O_p) * 2         # bf16 weights
        + (H1 + H2 + O_p) * 4                       # f32 biases
    )
    compiler_kwargs = dict(dimension_semantics=("parallel",))
    if vmem_bytes > 10 * 1024 * 1024:
        compiler_kwargs["vmem_limit_bytes"] = min(int(vmem_bytes * 1.6), 48 * 1024 * 1024)

    return pl.pallas_call(
        _r3m_mlp_kernel,
        out_shape=jax.ShapeDtypeStruct((B_p, O_p), jnp.float32),
        grid_spec=pltpu.PrefetchScalarGridSpec(
            num_scalar_prefetch=0,
            grid=grid,
            in_specs=[
                pl.BlockSpec((bt, D), lambda i: (i, 0)),   # x tile (batch-tiled only)
                const((D, H1)), const((1, H1)),            # layer 1
                const((H1, H2)), const((1, H2)),           # layer 2
                const((H2, O_p)), const((1, O_p)),         # layer 3 (O padded to 128)
            ],
            out_specs=pl.BlockSpec((bt, O_p), lambda i: (i, 0)),
        ),
        compiler_params=pltpu.CompilerParams(**compiler_kwargs),
        cost_estimate=pl.CostEstimate(
            flops=flops, transcendentals=0, bytes_accessed=bytes_accessed),
    )


# ---------------------------------------------------------------------------
# One-time parameter preparation (hoisted out of the per-call path):
#   - weights -> bf16 [in, out]
#   - biases  -> f32 [1, out]
#   - final layer's output dim padded to a multiple of 128 lanes
# ---------------------------------------------------------------------------
def prepare_r3m_params(params):
    O = params["w3"].shape[1]
    O_p = _round_up(O, 128)
    prepared = {
        "w1": jnp.asarray(params["w1"], jnp.bfloat16),
        "b1": jnp.asarray(params["b1"], jnp.float32),
        "w2": jnp.asarray(params["w2"], jnp.bfloat16),
        "b2": jnp.asarray(params["b2"], jnp.float32),
        "w3": _pad_to(jnp.asarray(params["w3"], jnp.float32),
                      (params["w3"].shape[0], O_p)).astype(jnp.bfloat16),
        "b3": _pad_to(jnp.asarray(params["b3"], jnp.float32), (1, O_p)),
        "output_dim": O,
    }
    return prepared


def r3m_cnn_forward(features, prepared_params, *, batch_tile=512):
    """R3MCNN MLP forward pass via a fused Pallas TPU kernel.

    Args:
        features: [B, r3m_feature_dim] array (any float dtype; cast to bf16 in-kernel).
        prepared_params: output of prepare_r3m_params().
        batch_tile: max batch tile (128-multiples; auto-shrunk to keep >= 2 grid steps).

    Returns:
        [B, output_dim] float32 array.
    """
    p = prepared_params
    w1, b1, w2, b2, w3, b3 = p["w1"], p["b1"], p["w2"], p["b2"], p["w3"], p["b3"]
    O = p["output_dim"]

    B, D = features.shape
    H1, H2, O_p = w1.shape[1], w2.shape[1], w3.shape[1]

    # Pad batch only to a multiple of 8 sublanes (and only when needed); the grid
    # handles a ragged last tile, so no full-tile zero-pad of the batch.
    B_p = _round_up(max(B, 1), 8)
    x_in = features if B_p == B else jnp.pad(features, ((0, B_p - B), (0, 0)))

    bt = _choose_batch_tile(B_p, batch_tile)

    fn = _build_pallas_fn(bt, B_p, D, H1, H2, O_p, jnp.dtype(x_in.dtype).itemsize)
    out = fn(x_in, w1, b1, w2, b2, w3, b3)
    return out[:B, :O]


# ---------------------------------------------------------------------------
# Deterministic parameter init (nn.init.orthogonal_ with gain=sqrt(2), zero bias).
# ---------------------------------------------------------------------------
def _orthogonal(key, out_dim, in_dim, gain):
    rows, cols = out_dim, in_dim
    a = jax.random.normal(key, (rows, cols), dtype=jnp.float32)
    if rows < cols:
        a = a.T
    q, r = jnp.linalg.qr(a)
    d = jnp.sign(jnp.diag(r))
    q = q * d[None, :]
    if rows < cols:
        q = q.T
    return gain * q  # [out_dim, in_dim] (PyTorch convention)


def init_r3m_cnn_params(key, r3m_feature_dim, output_dim, hidden_dims=(512, 256)):
    gain = jnp.sqrt(2.0)  # nn.init.calculate_gain('relu')
    dims = [r3m_feature_dim] + list(hidden_dims) + [output_dim]
    keys = jax.random.split(key, len(dims) - 1)
    params = {}
    for li, (k, in_d, out_d) in enumerate(zip(keys, dims[:-1], dims[1:]), start=1):
        w_pt = _orthogonal(k, out_d, in_d, gain)        # [out, in]
        params[f"w{li}"] = jnp.asarray(w_pt.T)          # stored as [in, out] for x @ W
        params[f"b{li}"] = jnp.zeros((1, out_d), jnp.float32)
    return params


def _reference_forward(features, params):
    # Pure-JAX reference using the same bf16-operand / f32-accumulate math.
    bf16, f32 = jnp.bfloat16, jnp.float32

    def lin(x, w, b):
        return jnp.dot(x.astype(bf16), w.astype(bf16), preferred_element_type=f32) + b

    h = jnp.maximum(lin(features, params["w1"], params["b1"]), 0.0)
    h = jnp.maximum(lin(h, params["w2"], params["b2"]), 0.0)
    return lin(h, params["w3"], params["b3"])


if __name__ == "__main__":
    # Small deterministic example consistent with the module's forward:
    # features: (batch_size, r3m_feature_dim)
    batch = 8
    r3m_feature_dim = 128
    output_dim = 8
    hidden_dims = (512, 256)  # module defaults

    key = jax.random.PRNGKey(0)
    k_param, k_x = jax.random.split(key)

    params = init_r3m_cnn_params(k_param, r3m_feature_dim, output_dim, hidden_dims)
    prepared = prepare_r3m_params(params)  # one-time pad/cast, cached by caller
    features = jax.random.normal(k_x, (batch, r3m_feature_dim), dtype=jnp.float32)

    out = r3m_cnn_forward(features, prepared)
    out = jax.block_until_ready(out)

    ref = _reference_forward(features, params)
    assert out.shape == (batch, output_dim), out.shape
    assert jnp.allclose(out, ref, atol=1e-2, rtol=1e-2), "mismatch vs reference"

    print("KERNEL_OK")
</pallas_src>

<mosaic_0001>
module attributes {stable_mosaic.version = 11 : i64} {
  func.func @_r3m_mlp_kernel(%arg0: i32, %arg1: memref<8x128xf32, #tpu.memory_space<vmem>>, %arg2: memref<128x512xbf16, #tpu.memory_space<vmem>>, %arg3: memref<1x512xf32, #tpu.memory_space<vmem>>, %arg4: memref<512x256xbf16, #tpu.memory_space<vmem>>, %arg5: memref<1x256xf32, #tpu.memory_space<vmem>>, %arg6: memref<256x128xbf16, #tpu.memory_space<vmem>>, %arg7: memref<1x128xf32, #tpu.memory_space<vmem>>, %arg8: memref<8x128xf32, #tpu.memory_space<vmem>>) attributes {dimension_semantics = [#tpu.dimension_semantics<parallel>], iteration_bounds = array<i64: 1>, scalar_prefetch = 0 : i64, scratch_operands = 0 : i64, tpu.core_type = #tpu.core_type<tc>, window_params = [{transform_indices = @transform_0, window_bounds = array<i64: 8, 128>}, {pipeline_mode = #tpu.pipeline_mode<synchronous>, transform_indices = @transform_1, window_bounds = array<i64: 128, 512>}, {pipeline_mode = #tpu.pipeline_mode<synchronous>, transform_indices = @transform_2, window_bounds = array<i64: 1, 512>}, {pipeline_mode = #tpu.pipeline_mode<synchronous>, transform_indices = @transform_3, window_bounds = array<i64: 512, 256>}, {pipeline_mode = #tpu.pipeline_mode<synchronous>, transform_indices = @transform_4, window_bounds = array<i64: 1, 256>}, {pipeline_mode = #tpu.pipeline_mode<synchronous>, transform_indices = @transform_5, window_bounds = array<i64: 256, 128>}, {pipeline_mode = #tpu.pipeline_mode<synchronous>, transform_indices = @transform_6, window_bounds = array<i64: 1, 128>}, {transform_indices = @transform_7, window_bounds = array<i64: 8, 128>}]} {
    %c0 = arith.constant 0 : index
    %c0_0 = arith.constant 0 : index
    %0 = vector.load %arg1[%c0, %c0_0] : memref<8x128xf32, #tpu.memory_space<vmem>>, vector<8x128xf32>
    %1 = arith.truncf %0 : vector<8x128xf32> to vector<8x128xbf16>
    %c0_1 = arith.constant 0 : index
    %c0_2 = arith.constant 0 : index
    %2 = vector.load %arg2[%c0_1, %c0_2] : memref<128x512xbf16, #tpu.memory_space<vmem>>, vector<128x512xbf16>
    %cst = arith.constant dense<0.000000e+00> : vector<8x512xf32>
    %3 = tpu.matmul %1, %2, %cst {dimension_numbers = #tpu.dot_dimension_numbers<[1], [0], [0], [1], [0, 0, 1, 1], [], []>} : vector<8x128xbf16>, vector<128x512xbf16>, vector<8x512xf32> -> vector<8x512xf32>
    %c0_3 = arith.constant 0 : index
    %c0_4 = arith.constant 0 : index
    %4 = vector.load %arg3[%c0_3, %c0_4] : memref<1x512xf32, #tpu.memory_space<vmem>>, vector<1x512xf32>
    %5 = vector.broadcast %4 : vector<1x512xf32> to vector<8x512xf32>
    %6 = arith.addf %3, %5 : vector<8x512xf32>
    %cst_5 = arith.constant 0.000000e+00 : f32
    %7 = vector.broadcast %cst_5 : f32 to vector<8x512xf32>
    %8 = arith.maximumf %6, %7 : vector<8x512xf32>
    %9 = arith.truncf %8 : vector<8x512xf32> to vector<8x512xbf16>
    %c0_6 = arith.constant 0 : index
    %c0_7 = arith.constant 0 : index
    %10 = vector.load %arg4[%c0_6, %c0_7] : memref<512x256xbf16, #tpu.memory_space<vmem>>, vector<512x256xbf16>
    %cst_8 = arith.constant dense<0.000000e+00> : vector<8x256xf32>
    %11 = tpu.matmul %9, %10, %cst_8 {dimension_numbers = #tpu.dot_dimension_numbers<[1], [0], [0], [1], [0, 0, 1, 1], [], []>} : vector<8x512xbf16>, vector<512x256xbf16>, vector<8x256xf32> -> vector<8x256xf32>
    %c0_9 = arith.constant 0 : index
    %c0_10 = arith.constant 0 : index
    %12 = vector.load %arg5[%c0_9, %c0_10] : memref<1x256xf32, #tpu.memory_space<vmem>>, vector<1x256xf32>
    %13 = vector.broadcast %12 : vector<1x256xf32> to vector<8x256xf32>
    %14 = arith.addf %11, %13 : vector<8x256xf32>
    %cst_11 = arith.constant 0.000000e+00 : f32
    %15 = vector.broadcast %cst_11 : f32 to vector<8x256xf32>
    %16 = arith.maximumf %14, %15 : vector<8x256xf32>
    %17 = arith.truncf %16 : vector<8x256xf32> to vector<8x256xbf16>
    %c0_12 = arith.constant 0 : index
    %c0_13 = arith.constant 0 : index
    %18 = vector.load %arg6[%c0_12, %c0_13] : memref<256x128xbf16, #tpu.memory_space<vmem>>, vector<256x128xbf16>
    %cst_14 = arith.constant dense<0.000000e+00> : vector<8x128xf32>
    %19 = tpu.matmul %17, %18, %cst_14 {dimension_numbers = #tpu.dot_dimension_numbers<[1], [0], [0], [1], [0, 0, 1, 1], [], []>} : vector<8x256xbf16>, vector<256x128xbf16>, vector<8x128xf32> -> vector<8x128xf32>
    %c0_15 = arith.constant 0 : index
    %c0_16 = arith.constant 0 : index
    %20 = vector.load %arg7[%c0_15, %c0_16] : memref<1x128xf32, #tpu.memory_space<vmem>>, vector<1x128xf32>
    %21 = vector.broadcast %20 : vector<1x128xf32> to vector<8x128xf32>
    %22 = arith.addf %19, %21 : vector<8x128xf32>
    %c0_17 = arith.constant 0 : index
    %c0_18 = arith.constant 0 : index
    %23 = vector.load %arg8[%c0_17, %c0_18] : memref<8x128xf32, #tpu.memory_space<vmem>>, vector<8x128xf32>
    tpu.vector_store %arg8[%c0_17, %c0_18], %22 {strides = array<i32>} : memref<8x128xf32, #tpu.memory_space<vmem>>, vector<8x128xf32>,
    return
  }
  func.func @transform_0(%arg0: i32) -> (i32, i32) {
    %c0_i32 = arith.constant 0 : i32
    %c0_i32_0 = arith.constant 0 : i32
    return %arg0, %c0_i32 : i32, i32
  }
  func.func @transform_1(%arg0: i32) -> (i32, i32) {
    %c0_i32 = arith.constant 0 : i32
    %c0_i32_0 = arith.constant 0 : i32
    %c0_i32_1 = arith.constant 0 : i32
    return %c0_i32, %c0_i32_0 : i32, i32
  }
  func.func @transform_2(%arg0: i32) -> (i32, i32) {
    %c0_i32 = arith.constant 0 : i32
    %c0_i32_0 = arith.constant 0 : i32
    %c0_i32_1 = arith.constant 0 : i32
    return %c0_i32, %c0_i32_0 : i32, i32
  }
  func.func @transform_3(%arg0: i32) -> (i32, i32) {
    %c0_i32 = arith.constant 0 : i32
    %c0_i32_0 = arith.constant 0 : i32
    %c0_i32_1 = arith.constant 0 : i32
    return %c0_i32, %c0_i32_0 : i32, i32
  }
  func.func @transform_4(%arg0: i32) -> (i32, i32) {
    %c0_i32 = arith.constant 0 : i32
    %c0_i32_0 = arith.constant 0 : i32
    %c0_i32_1 = arith.constant 0 : i32
    return %c0_i32, %c0_i32_0 : i32, i32
  }
  func.func @transform_5(%arg0: i32) -> (i32, i32) {
    %c0_i32 = arith.constant 0 : i32
    %c0_i32_0 = arith.constant 0 : i32
    %c0_i32_1 = arith.constant 0 : i32
    return %c0_i32, %c0_i32_0 : i32, i32
  }
  func.func @transform_6(%arg0: i32) -> (i32, i32) {
    %c0_i32 = arith.constant 0 : i32
    %c0_i32_0 = arith.constant 0 : i32
    %c0_i32_1 = arith.constant 0 : i32
    return %c0_i32, %c0_i32_0 : i32, i32
  }
  func.func @transform_7(%arg0: i32) -> (i32, i32) {
    %c0_i32 = arith.constant 0 : i32
    %c0_i32_0 = arith.constant 0 : i32
    return %arg0, %c0_i32 : i32, i32
  }
}

</mosaic_0001>

<bundles_post_ra>
// kernel: tpu_custom_call.1
= control target key start
LH: loop header
LB: loop body
LE: loop exit
PB: predicated region body
PF: predicated region fallthrough
CT: control target
= control target key end

     0   :  { %12 = vsyncpa [#allocation3], 0  ;;  %s1638_s0 = inlined_call_operand.hbm [shape: f32[8,128], index: 0, kind: input, shape index: {}]   ;;  %s1639_s1 = inlined_call_operand.hbm [shape: bf16[128,512], index: 1, kind: input, shape index: {}]   ;;  %s1640_s2 = inlined_call_operand.vmem [shape: f32[1,512], index: 2, kind: input, shape index: {}]   ;;  %s1641_s3 = inlined_call_operand.hbm [shape: bf16[512,256], index: 3, kind: input, shape index: {}]   ;;  %s1642_s4 = inlined_call_operand.vmem [shape: f32[1,256], index: 4, kind: input, shape index: {}]   ;;  %s1643_s5 = inlined_call_operand.hbm [shape: bf16[256,128], index: 5, kind: input, shape index: {}]   ;;  %s1644_s6 = inlined_call_operand.vmem [shape: f32[1,128], index: 6, kind: input, shape index: {}]   ;;  %s1645_s7 = inlined_call_operand.hbm [shape: f32[8,128], index: 7, kind: output, shape index: {}]  }
   0x1   :  { %13 = vsyncpa [#allocation6], 0 }
   0x2   :  { %14 = vsyncpa [#allocation9], 0 }
   0x3   :  { %15 = vsyncpa [#allocation4], 0  ;;  %s1493_s24 = smov [#allocation5]   ;;  %s1375_s28 = scalar_lea.hbm %s1639_s1, 4096 }
   0x4   :  { %s31_s25 = sshll.u32 %s1493_s24, 4  ;;  %p1376_p0 = scmp.ne.s32.totalorder %s1639_s1, %s1375_s28  ;;  %s32_s25 = int_to_ptr.vmem [resolvable:$true] %s31_s25 }
   0x5   :  { %p1379_p1 = scmp.lt.u32.totalorder %s1375_s28, %s1639_s1 }
   0x7   :  { %p1381_p2 = pnand %p1379_p1, %p1376_p0 }
   0x9   :  { %1384 = shalt.err (!%p1381_p2)
}
   0xa   :  { %s1385_s10 = scalar_lea.vmem %s32_s25, 4096  ;;  %p1390_p4 = scmp.lt.s32.totalorder %s32_s25, %s32_s25 }
   0xb   :  { %p1386_p3 = scmp.ne.s32.totalorder %s32_s25, %s1385_s10  ;;  %p1391_p5 = scmp.lt.s32.totalorder %s1385_s10, %s1385_s10 }
   0xd   :  { %p1392_p6 = por %p1391_p5, %p1390_p4 }
   0xf   :  { %p1393_p7 = pnand %p1392_p6, %p1386_p3 }
  0x11   :  { %1396 = shalt.err (!%p1393_p7)
}
  0x12   :  { %s1494_s11 = smov 256   ;;  %s1495_s12 = smov 16  }
  0x13   :  { %37 = dma.hbm_to_vmem [thread:$0]  %s1639_s1, 4096, %s32_s25, [#allocation6], %s1494_s11, %s1494_s11, %s1495_s12  }
  0x14   :  { %s1496_s15 = smov [#allocation2]   ;;  %s1497_s17 = smov [#allocation7]  }
  0x15   :  { %s22_s16 = sshll.u32 %s1496_s15, 4  ;;  %s45_s18 = sshll.u32 %s1497_s17, 4  ;;  %s23_s16 = int_to_ptr.vmem [resolvable:$true] %s22_s16  ;;  %s46_s18 = int_to_ptr.vmem [resolvable:$true] %s45_s18 }
  0x16   :  { %s1397_s21 = scalar_lea.hbm %s1638_s0, 128 }
  0x17   :  { %p1398_p8 = scmp.ne.s32.totalorder %s1638_s0, %s1397_s21  ;;  %p1401_p9 = scmp.lt.u32.totalorder %s1397_s21, %s1638_s0 }
  0x19   :  { %p1403_p10 = pnand %p1401_p9, %p1398_p8 }
  0x1b   :  { %1406 = shalt.err (!%p1403_p10)
}
  0x1c   :  { %s1407_s1 = scalar_lea.vmem %s23_s16, 128  ;;  %p1412_p12 = scmp.lt.s32.totalorder %s23_s16, %s23_s16 }
  0x1d   :  { %p1408_p11 = scmp.ne.s32.totalorder %s23_s16, %s1407_s1  ;;  %p1413_p13 = scmp.lt.s32.totalorder %s1407_s1, %s1407_s1 }
  0x1f   :  { %p1414_p0 = por %p1413_p13, %p1412_p12 }
  0x21   :  { %p1415_p1 = pnand %p1414_p0, %p1408_p11 }
  0x23   :  { %1418 = shalt.err (!%p1415_p1)
}
  0x24   :  { %25 = dma.hbm_to_vmem [thread:$0]  %s1638_s0, 128, %s23_s16, [#allocation3]  }
  0x25   :  { %s1419_s30 = scalar_lea.hbm %s1641_s3, 8192 }
  0x26   :  { %p1420_p2 = scmp.ne.s32.totalorder %s1641_s3, %s1419_s30  ;;  %p1423_p3 = scmp.lt.u32.totalorder %s1419_s30, %s1641_s3 }
  0x28   :  { %p1425_p4 = pnand %p1423_p3, %p1420_p2 }
  0x2a   :  { %1428 = shalt.err (!%p1425_p4)
}
  0x2b   :  { %s1429_s12 = scalar_lea.vmem %s46_s18, 8192  ;;  %p1434_p6 = scmp.lt.s32.totalorder %s46_s18, %s46_s18 }
  0x2c   :  { %p1430_p5 = scmp.ne.s32.totalorder %s46_s18, %s1429_s12  ;;  %p1435_p7 = scmp.lt.s32.totalorder %s1429_s12, %s1429_s12 }
  0x2e   :  { %p1436_p8 = por %p1435_p7, %p1434_p6 }
  0x30   :  { %p1437_p9 = pnand %p1436_p8, %p1430_p5 }
  0x32   :  { %1440 = shalt.err (!%p1437_p9)
}
  0x33   :  { %s1498_s0 = smov 128   ;;  %s1499_s13 = smov 8  }
  0x34   :  { %51 = dma.hbm_to_vmem [thread:$0]  %s1641_s3, 8192, %s46_s18, [#allocation6], %s1498_s0, %s1498_s0, %s1499_s13  }
  0x35   :  { %s1500_s16 = smov [#allocation8]   ;;  %s1441_s21 = scalar_lea.hbm %s1643_s5, 2048 }
  0x36   :  { %s59_s17 = sshll.u32 %s1500_s16, 4  ;;  %p1442_p10 = scmp.ne.s32.totalorder %s1643_s5, %s1441_s21  ;;  %s60_s17 = int_to_ptr.vmem [resolvable:$true] %s59_s17 }
  0x37   :  { %p1445_p11 = scmp.lt.u32.totalorder %s1441_s21, %s1643_s5 }
  0x39   :  { %p1447_p12 = pnand %p1445_p11, %p1442_p10 }
  0x3b   :  { %1450 = shalt.err (!%p1447_p12)
}
  0x3c   :  { %s1451_s1 = scalar_lea.vmem %s60_s17, 2048  ;;  %p1456_p0 = scmp.lt.s32.totalorder %s60_s17, %s60_s17 }
  0x3d   :  { %p1452_p13 = scmp.ne.s32.totalorder %s60_s17, %s1451_s1  ;;  %p1457_p1 = scmp.lt.s32.totalorder %s1451_s1, %s1451_s1 }
  0x3f   :  { %p1458_p2 = por %p1457_p1, %p1456_p0 }
  0x41   :  { %p1459_p3 = pnand %p1458_p2, %p1452_p13 }
  0x43   :  { %1462 = shalt.err (!%p1459_p3)
}
  0x44   :  { %s1501_s3 = smov 64   ;;  %s1502_s18 = smov 4  }
  0x45   :  { %65 = dma.hbm_to_vmem [thread:$0]  %s1643_s5, 2048, %s60_s17, [#allocation9], %s1501_s3, %s1501_s3, %s1502_s18  }
  0x46   :  { %1485 = dma.done.wait [#allocation3], 128  }
  0x47   :  { %1486 = vsyncadd [#allocation3], 4294967168 }
  0x48   :  { %1487 = dma.done.wait [#allocation6], 12288  }
  0x49   :  { %1488 = vsyncadd [#allocation6], 4294955008 }
  0x4a   :  { %1489 = dma.done.wait [#allocation9], 2048  }
  0x4b   :  { %1490 = vsyncadd [#allocation9], 4294965248  ;;  %v1503_v0 = vmov 0   ;;  %v1215_v1 = vld [vmem:[#allocation5 + $0x4] ss:$16 sps:$4 sm:$0xff]   ;;  %v81_v22 = vld [vmem:[#allocation2] sm:$0xff] }
  0x4c   :  { %329 = vmatprep.mubr.bf16.mxu1 %v1503_v0  ;;  %v1217_v2 = vld [vmem:[#allocation5] ss:$16 sps:$4 sm:$0xff]   ;;  %297 = vmatprep.subr.bf16.mxu1 %v1215_v1  ;;  %v1218_v3 = vld [vmem:[#allocation5 + $0x24] ss:$16 sps:$4 sm:$0xff]   ;;  %v1241_v23 = vld [vmem:[#allocation5 + $0xc] ss:$16 sps:$4 sm:$0xff]   ;;  %v1593_v25 = vpack.c.bf16 %v81_v22, %v81_v22 }
  0x4d   :  { %298 = vmatpush1.bf16.msra.mxu1 %v1217_v2  ;;  %v1220_v4 = vld [vmem:[#allocation5 + $0x20] ss:$16 sps:$4 sm:$0xff]   ;;  %v1221_v5 = vld [vmem:[#allocation5 + $0x44] ss:$16 sps:$4 sm:$0xff]   ;;  %v1239_v27 = vld [vmem:[#allocation5 + $0x8] ss:$16 sps:$4 sm:$0xff]  }
  0x4e   :  { %299 = vmatprep.subr.bf16.mxu1 %v1218_v3  ;;  %v1223_v6 = vld [vmem:[#allocation5 + $0x40] ss:$16 sps:$4 sm:$0xff]   ;;  %v1224_v7 = vld [vmem:[#allocation5 + $0x64] ss:$16 sps:$4 sm:$0xff]   ;;  %v1244_v28 = vld [vmem:[#allocation5 + $0x2c] ss:$16 sps:$4 sm:$0xff]  }
  0x4f   :  { %v1226_v8 = vld [vmem:[#allocation5 + $0x60] ss:$16 sps:$4 sm:$0xff]   ;;  %v1227_v9 = vld [vmem:[#allocation5 + $0x84] ss:$16 sps:$4 sm:$0xff]   ;;  %v1242_v31 = vld [vmem:[#allocation5 + $0x28] ss:$16 sps:$4 sm:$0xff]  }
  0x50   :  { %v1229_v10 = vld [vmem:[#allocation5 + $0x80] ss:$16 sps:$4 sm:$0xff]   ;;  %v1230_v11 = vld [vmem:[#allocation5 + $0xa4] ss:$16 sps:$4 sm:$0xff]   ;;  %v1247_v32 = vld [vmem:[#allocation5 + $0x4c] ss:$16 sps:$4 sm:$0xff]  }
  0x51   :  { %300 = vmatpush1.bf16.msra.mxu1 %v1220_v4  ;;  %v1232_v12 = vld [vmem:[#allocation5 + $0xa0] ss:$16 sps:$4 sm:$0xff]   ;;  %v1233_v13 = vld [vmem:[#allocation5 + $0xc4] ss:$16 sps:$4 sm:$0xff]   ;;  %v1245_v34 = vld [vmem:[#allocation5 + $0x48] ss:$16 sps:$4 sm:$0xff]  }
  0x52   :  { %301 = vmatprep.subr.bf16.mxu1 %v1221_v5  ;;  %v1235_v14 = vld [vmem:[#allocation5 + $0xc0] ss:$16 sps:$4 sm:$0xff]   ;;  %v1263_v15 = vld [vmem:[#allocation7 + $0x4] ss:$8 sps:$4 sm:$0xff]   ;;  %v1266_v17 = vld [vmem:[#allocation7 + $0x14] ss:$8 sps:$4 sm:$0xff]  }
  0x53   :  { %v1265_v16 = vld [vmem:[#allocation7] ss:$8 sps:$4 sm:$0xff]   ;;  %v1236_v18 = vld [vmem:[#allocation5 + $0xe4] ss:$16 sps:$4 sm:$0xff]   ;;  %783 = vmatprep.subr.bf16.mxu0 %v1263_v15  ;;  %v1268_v19 = vld [vmem:[#allocation7 + $0x10] ss:$8 sps:$4 sm:$0xff]  }
  0x54   :  { %784 = vmatpush1.bf16.msra.mxu0 %v1265_v16  ;;  %v1238_v20 = vld [vmem:[#allocation5 + $0xe0] ss:$16 sps:$4 sm:$0xff]   ;;  %v1269_v21 = vld [vmem:[#allocation7 + $0x24] ss:$8 sps:$4 sm:$0xff]   ;;  %v1272_v26 = vld [vmem:[#allocation7 + $0x34] ss:$8 sps:$4 sm:$0xff]   ;;  %v117_v16 = vlaneseq }
  0x55   :  { %302 = vmatpush1.bf16.msra.mxu1 %v1223_v6  ;;  %785 = vmatprep.subr.bf16.mxu0 %v1266_v17  ;;  %v1271_v24 = vld [vmem:[#allocation7 + $0x20] ss:$8 sps:$4 sm:$0xff]   ;;  %v1274_v29 = vld [vmem:[#allocation7 + $0x30] ss:$8 sps:$4 sm:$0xff]   ;;  %v1275_v30 = vld [vmem:[#allocation7 + $0x44] ss:$8 sps:$4 sm:$0xff]  }
  0x56   :  { %303 = vmatprep.subr.bf16.mxu1 %v1224_v7  ;;  %v1277_v33 = vld [vmem:[#allocation7 + $0x40] ss:$8 sps:$4 sm:$0xff]   ;;  %v1278_v35 = vld [vmem:[#allocation7 + $0x54] ss:$8 sps:$4 sm:$0xff]   ;;  %v1280_v37 = vld [vmem:[#allocation7 + $0x50] ss:$8 sps:$4 sm:$0xff]  }
  0x57   :  { %v1250_v36 = vld [vmem:[#allocation5 + $0x6c] ss:$16 sps:$4 sm:$0xff]   ;;  %v1248_v39 = vld [vmem:[#allocation5 + $0x68] ss:$16 sps:$4 sm:$0xff]   ;;  %v1359_v4 = vld [vmem:[#allocation8 + $0x40] sm:$0xff]   ;;  %v1597_v17 = vshrl.u32 %v117_v16, 7 }
  0x58   :  { %786 = vmatpush1.bf16.msra.mxu0 %v1268_v19  ;;  %v1281_v38 = vld [vmem:[#allocation7 + $0x64] ss:$8 sps:$4 sm:$0xff]   ;;  %v1283_v41 = vld [vmem:[#allocation7 + $0x60] ss:$8 sps:$4 sm:$0xff]   ;;  %v1284_v42 = vld [vmem:[#allocation7 + $0x74] ss:$8 sps:$4 sm:$0xff]  }
  0x59   :  { %304 = vmatpush1.bf16.msra.mxu1 %v1226_v8  ;;  %787 = vmatprep.subr.bf16.mxu0 %v1269_v21  ;;  %v1253_v40 = vld [vmem:[#allocation5 + $0x8c] ss:$16 sps:$4 sm:$0xff]   ;;  %v1251_v43 = vld [vmem:[#allocation5 + $0x88] ss:$16 sps:$4 sm:$0xff]   ;;  %v1360_v5 = vld [vmem:[#allocation8] sm:$0xff]   ;;  %s1504_s8 = smov [#allocation10]  }
  0x5a   :  { %305 = vmatprep.subr.bf16.mxu1 %v1227_v9  ;;  %v1256_v44 = vld [vmem:[#allocation5 + $0xac] ss:$16 sps:$4 sm:$0xff]   ;;  %v1286_v45 = vld [vmem:[#allocation7 + $0x70] ss:$8 sps:$4 sm:$0xff]   ;;  %v1289_v49 = vld [vmem:[#allocation7 + $0x80] ss:$8 sps:$4 sm:$0xff]  }
  0x5b   :  { %v1287_v46 = vld [vmem:[#allocation7 + $0x84] ss:$8 sps:$4 sm:$0xff]   ;;  %v1254_v47 = vld [vmem:[#allocation5 + $0xa8] ss:$16 sps:$4 sm:$0xff]   ;;  %v1290_v50 = vld [vmem:[#allocation7 + $0x94] ss:$8 sps:$4 sm:$0xff]  }
  0x5c   :  { %788 = vmatpush1.bf16.msra.mxu0 %v1271_v24  ;;  %v1259_v48 = vld [vmem:[#allocation5 + $0xcc] ss:$16 sps:$4 sm:$0xff]   ;;  %v1257_v51 = vld [vmem:[#allocation5 + $0xc8] ss:$16 sps:$4 sm:$0xff]   ;;  %v1363_v8 = vld [vmem:[#allocation8 + $0x50] sm:$0xff]   ;;  %s1051_s9 = sshll.u32 %s1504_s8, 4  ;;  %s1052_s9 = int_to_ptr.vmem [resolvable:$true] %s1051_s9 }
  0x5d   :  { %306 = vmatpush1.bf16.msra.mxu1 %v1229_v10  ;;  %789 = vmatprep.subr.bf16.mxu0 %v1272_v26  ;;  %v1262_v52 = vld [vmem:[#allocation5 + $0xec] ss:$16 sps:$4 sm:$0xff]   ;;  %v1292_v53 = vld [vmem:[#allocation7 + $0x90] ss:$8 sps:$4 sm:$0xff]   ;;  %v1295_v56 = vld [vmem:[#allocation7 + $0xa0] ss:$8 sps:$4 sm:$0xff]   ;;  %p1468_p5 = scmp.lt.s32.totalorder %s1052_s9, %s1052_s9 }
  0x5e   :  { %307 = vmatprep.subr.bf16.mxu1 %v1230_v11  ;;  %v1293_v54 = vld [vmem:[#allocation7 + $0xa4] ss:$8 sps:$4 sm:$0xff]   ;;  %v1260_v55 = vld [vmem:[#allocation5 + $0xe8] ss:$16 sps:$4 sm:$0xff]   ;;  %v1296_v57 = vld [vmem:[#allocation7 + $0xb4] ss:$8 sps:$4 sm:$0xff]  }
  0x5f   :  { %v1298_v58 = vld [vmem:[#allocation7 + $0xb0] ss:$8 sps:$4 sm:$0xff]   ;;  %v1299_v59 = vld [vmem:[#allocation7 + $0xc4] ss:$8 sps:$4 sm:$0xff]   ;;  %v1301_v60 = vld [vmem:[#allocation7 + $0xc0] ss:$8 sps:$4 sm:$0xff]  }
  0x60   :  { %790 = vmatpush1.bf16.msra.mxu0 %v1274_v29  ;;  %v1302_v61 = vld [vmem:[#allocation7 + $0xd4] ss:$8 sps:$4 sm:$0xff]   ;;  %v1304_v62 = vld [vmem:[#allocation7 + $0xd0] ss:$8 sps:$4 sm:$0xff]   ;;  %v1305_v63 = vld [vmem:[#allocation7 + $0xe4] ss:$8 sps:$4 sm:$0xff]  }
  0x61   :  { %308 = vmatpush1.bf16.msra.mxu1 %v1232_v12  ;;  %791 = vmatprep.subr.bf16.mxu0 %v1275_v30  ;;  %v1308_v1 = vld [vmem:[#allocation7 + $0xf4] ss:$8 sps:$4 sm:$0xff]   ;;  %v1310_v2 = vld [vmem:[#allocation7 + $0xf0] ss:$8 sps:$4 sm:$0xff]   ;;  %v1313_v3 = vld [vmem:[#allocation7 + $0x104] ss:$8 sps:$4 sm:$0xff]  }
  0x62   :  { %309 = vmatprep.subr.bf16.mxu1 %v1233_v13  ;;  %v1361_v6 = vld [vmem:[#allocation8 + $0x48] sm:$0xff]   ;;  %v1364_v9 = vld [vmem:[#allocation8 + $0x10] sm:$0xff]   ;;  %v1365_v10 = vld [vmem:[#allocation8 + $0x58] sm:$0xff]   ;;  %s1463_s10 = scalar_lea.vmem %s1052_s9, 128 }
  0x63   :  { %v1362_v7 = vld [vmem:[#allocation8 + $0x8] sm:$0xff]   ;;  %v1366_v11 = vld [vmem:[#allocation8 + $0x18] sm:$0xff]   ;;  %v1367_v12 = vld [vmem:[#allocation8 + $0x60] sm:$0xff]   ;;  %p1464_p4 = scmp.ne.s32.totalorder %s1052_s9, %s1463_s10  ;;  %p1469_p6 = scmp.lt.s32.totalorder %s1463_s10, %s1463_s10 }
  0x64   :  { %792 = vmatpush1.bf16.msra.mxu0 %v1277_v33  ;;  %v1368_v13 = vld [vmem:[#allocation8 + $0x20] sm:$0xff]   ;;  %v1370_v15 = vld [vmem:[#allocation8 + $0x28] sm:$0xff]   ;;  %v1603_v19 = vld [vmem:[%s1640_s2] sm:$0xf] }
  0x65   :  { %310 = vmatpush1.bf16.msra.mxu1 %v1235_v14  ;;  %793 = vmatprep.subr.bf16.mxu0 %v1278_v35  ;;  %v1369_v14 = vld [vmem:[#allocation8 + $0x68] sm:$0xff]   ;;  %v1314_v35 = vld [vmem:[#allocation7 + $0x110] ss:$8 sps:$4 sm:$0xff]   ;;  %p1470_p7 = por %p1469_p6, %p1468_p5 }
  0x66   :  { %311 = vmatprep.subr.bf16.mxu1 %v1236_v18  ;;  %v119_v18 = vsub.s32 0, %v1597_v17  ;;  %v1373_v16 = vld [vmem:[#allocation8 + $0x78] sm:$0xff]  }
  0x67   :  { %p1471_p8 = pnand %p1470_p7, %p1464_p4 }
  0x68   :  { %794 = vmatpush1.bf16.msra.mxu0 %v1280_v37  ;;  %v120_v21 = vrot.slane %v1603_v19, %v119_v18  ;;  %v1317_v37 = vld [vmem:[#allocation7 + $0x120] ss:$8 sps:$4 sm:$0xff]  }
  0x69   :  { %312 = vmatpush1.bf16.msra.mxu1 %v1238_v20  ;;  %795 = vmatprep.subr.bf16.mxu0 %v1281_v38  ;;  %v123_v20 = vsub.s32 1, %v1597_v17  ;;  %v1322_v38 = vld [vmem:[#allocation7 + $0x134] ss:$8 sps:$4 sm:$0xff]  }
  0x6a   :  { %338 = vmatprep.subr.bf16.mxu1 %v1241_v23 }
  0x6b   :  { %v124_v22 = vrot.slane %v1603_v19, %v123_v20 }
  0x6c   :  { %330 = vmatmul.mubr.bf16.vlgmr.msra.gmra.mrb[0].mxu1 %v1593_v25  ;;  %796 = vmatpush1.bf16.msra.mxu0 %v1283_v41  ;;  %v1323_v41 = vld [vmem:[#allocation7 + $0x140] ss:$8 sps:$4 sm:$0xff]  }
  0x6d   :  { %339 = vmatpush1.bf16.msra.mxu1 %v1239_v27  ;;  %370 = vmatprep.mubr.bf16.mxu1 %v1503_v0  ;;  %v1307_v0 = vld [vmem:[#allocation7 + $0xe0] ss:$8 sps:$4 sm:$0xff]  }
  0x6e   :  { %340 = vmatprep.subr.bf16.mxu1 %v1244_v28  ;;  %797 = vmatprep.subr.bf16.mxu0 %v1284_v42  ;;  %v1328_v42 = vld [vmem:[#allocation7 + $0x154] ss:$8 sps:$4 sm:$0xff]  }
  0x70   :  { %798 = vmatpush1.bf16.msra.mxu0 %v1286_v45  ;;  %v1331_v45 = vld [vmem:[#allocation7 + $0x164] ss:$8 sps:$4 sm:$0xff]  }
  0x71   :  { %341 = vmatpush1.bf16.msra.mxu1 %v1242_v31  ;;  %799 = vmatprep.subr.bf16.mxu0 %v1287_v46  ;;  %v1329_v46 = vld [vmem:[#allocation7 + $0x160] ss:$8 sps:$4 sm:$0xff]  }
  0x72   :  { %342 = vmatprep.subr.bf16.mxu1 %v1247_v32  ;;  %v1311_v32 = vld [vmem:[#allocation7 + $0x100] ss:$8 sps:$4 sm:$0xff]  }
  0x74   :  { %800 = vmatpush1.bf16.msra.mxu0 %v1289_v49 }
  0x75   :  { %343 = vmatpush1.bf16.msra.mxu1 %v1245_v34  ;;  %801 = vmatprep.subr.bf16.mxu0 %v1290_v50  ;;  %v1316_v34 = vld [vmem:[#allocation7 + $0x114] ss:$8 sps:$4 sm:$0xff]  }
  0x76   :  { %344 = vmatprep.subr.bf16.mxu1 %v1250_v36  ;;  %v1319_v36 = vld [vmem:[#allocation7 + $0x124] ss:$8 sps:$4 sm:$0xff]  }
  0x78   :  { %802 = vmatpush1.bf16.msra.mxu0 %v1292_v53 }
  0x79   :  { %345 = vmatpush1.bf16.msra.mxu1 %v1248_v39  ;;  %803 = vmatprep.subr.bf16.mxu0 %v1293_v54  ;;  %v1320_v39 = vld [vmem:[#allocation7 + $0x130] ss:$8 sps:$4 sm:$0xff]   ;;  %v1337_v54 = vld [vmem:[#allocation7 + $0x184] ss:$8 sps:$4 sm:$0xff]  }
  0x7a   :  { %346 = vmatprep.subr.bf16.mxu1 %v1253_v40  ;;  %v1325_v40 = vld [vmem:[#allocation7 + $0x144] ss:$8 sps:$4 sm:$0xff]  }
  0x7c   :  { %804 = vmatpush1.bf16.msra.mxu0 %v1295_v56 }
  0x7d   :  { %347 = vmatpush1.bf16.msra.mxu1 %v1251_v43  ;;  %805 = vmatprep.subr.bf16.mxu0 %v1296_v57  ;;  %v1326_v43 = vld [vmem:[#allocation7 + $0x150] ss:$8 sps:$4 sm:$0xff]   ;;  %v1335_v57 = vld [vmem:[#allocation7 + $0x180] ss:$8 sps:$4 sm:$0xff]  }
  0x7e   :  { %348 = vmatprep.subr.bf16.mxu1 %v1256_v44  ;;  %v131_v44 = vsub.s32 3, %v1597_v17 }
  0x80   :  { %806 = vmatpush1.bf16.msra.mxu0 %v1298_v58 }
  0x81   :  { %349 = vmatpush1.bf16.msra.mxu1 %v1254_v47  ;;  %807 = vmatprep.subr.bf16.mxu0 %v1299_v59  ;;  %v132_v47 = vrot.slane %v1603_v19, %v131_v44  ;;  %v1340_v59 = vld [vmem:[#allocation7 + $0x194] ss:$8 sps:$4 sm:$0xff]  }
  0x82   :  { %350 = vmatprep.subr.bf16.mxu1 %v1259_v48  ;;  %v1334_v48 = vld [vmem:[#allocation7 + $0x174] ss:$8 sps:$4 sm:$0xff]  }
  0x84   :  { %808 = vmatpush1.bf16.msra.mxu0 %v1301_v60  ;;  %v1338_v60 = vld [vmem:[#allocation7 + $0x190] ss:$8 sps:$4 sm:$0xff]  }
  0x85   :  { %351 = vmatpush1.bf16.msra.mxu1 %v1257_v51  ;;  %809 = vmatprep.subr.bf16.mxu0 %v1302_v61  ;;  %v1332_v51 = vld [vmem:[#allocation7 + $0x170] ss:$8 sps:$4 sm:$0xff]   ;;  %v1343_v61 = vld [vmem:[#allocation7 + $0x1a4] ss:$8 sps:$4 sm:$0xff]  }
  0x86   :  { %352 = vmatprep.subr.bf16.mxu1 %v1262_v52 }
  0x88   :  { %810 = vmatpush1.bf16.msra.mxu0 %v1304_v62  ;;  %v1341_v62 = vld [vmem:[#allocation7 + $0x1a0] ss:$8 sps:$4 sm:$0xff]  }
  0x89   :  { %353 = vmatpush1.bf16.msra.mxu1 %v1260_v55  ;;  %811 = vmatprep.subr.bf16.mxu0 %v1305_v63  ;;  %v1346_v63 = vld [vmem:[#allocation7 + $0x1b4] ss:$8 sps:$4 sm:$0xff]  }
  0x8a   :  { %1175 = vmatprep.subr.bf16.mxu1 %v1359_v4  ;;  %v1352_v4 = vld [vmem:[#allocation7 + $0x1d4] ss:$8 sps:$4 sm:$0xff]  }
  0x8c   :  { %371 = vmatmul.mubr.bf16.vlgmr.msra.gmra.mrb[4].mxu1 %v1593_v25  ;;  %812 = vmatpush1.bf16.msra.mxu0 %v1307_v0  ;;  %v1344_v0 = vld [vmem:[#allocation7 + $0x1b0] ss:$8 sps:$4 sm:$0xff]  }
  0x8d   :  { %813 = vmatprep.subr.bf16.mxu0 %v1308_v1  ;;  %1176 = vmatpush3.bf16.msra.mxu1 %v1360_v5  ;;  %v1349_v1 = vld [vmem:[#allocation7 + $0x1c4] ss:$8 sps:$4 sm:$0xff]   ;;  %v1350_v5 = vld [vmem:[#allocation7 + $0x1d0] ss:$8 sps:$4 sm:$0xff]  }
  0x8e   :  { %1177 = vmatprep.subr.bf16.mxu1 %v1361_v6 }
  0x90   :  { %814 = vmatpush1.bf16.msra.mxu0 %v1310_v2  ;;  %v1347_v2 = vld [vmem:[#allocation7 + $0x1c0] ss:$8 sps:$4 sm:$0xff]  }
  0x91   :  { %824 = vmatprep.subr.bf16.mxu0 %v1313_v3  ;;  %1178 = vmatpush3.bf16.msra.mxu1 %v1362_v7  ;;  %v127_v3 = vsub.s32 2, %v1597_v17  ;;  %v1355_v7 = vld [vmem:[#allocation7 + $0x1e4] ss:$8 sps:$4 sm:$0xff]  }
  0x92   :  { %1179 = vmatprep.subr.bf16.mxu1 %v1363_v8  ;;  %v1353_v8 = vld [vmem:[#allocation7 + $0x1e0] ss:$8 sps:$4 sm:$0xff]  }
  0x93   :  { %v128_v6 = vrot.slane %v1603_v19, %v127_v3  ;;  %v1374_v19 = vld [vmem:[#allocation8 + $0x38] sm:$0xff]  }
  0x95   :  { %1180 = vmatpush3.bf16.msra.mxu1 %v1364_v9 }
  0x96   :  { %1181 = vmatprep.subr.bf16.mxu1 %v1365_v10  ;;  %v1358_v10 = vld [vmem:[#allocation7 + $0x1f4] ss:$8 sps:$4 sm:$0xff]  }
  0x99   :  { %1182 = vmatpush3.bf16.msra.mxu1 %v1366_v11  ;;  %v1356_v11 = vld [vmem:[#allocation7 + $0x1f0] ss:$8 sps:$4 sm:$0xff]  }
  0x9a   :  { %1183 = vmatprep.subr.bf16.mxu1 %v1367_v12 }
  0x9d   :  { %1184 = vmatpush3.bf16.msra.mxu1 %v1368_v13 }
  0x9e   :  { %1185 = vmatprep.subr.bf16.mxu1 %v1369_v14  ;;  %v1371_v14 = vld [vmem:[#allocation8 + $0x70] sm:$0xff]  }
  0xa1   :  { %1186 = vmatpush3.bf16.msra.mxu1 %v1370_v15  ;;  %v1372_v15 = vld [vmem:[#allocation8 + $0x30] sm:$0xff]  }
  0xa2   :  { %1187 = vmatprep.subr.bf16.mxu1 %v1371_v14 }
  0xa5   :  { %1188 = vmatpush3.bf16.msra.mxu1 %v1372_v15 }
  0xa6   :  { %1189 = vmatprep.subr.bf16.mxu1 %v1373_v16 }
  0xa9   :  { %1190 = vmatpush3.bf16.msra.mxu1 %v1374_v19 }
 0x13f   :  { %v331_v23 = vpop.f32.mrb[0].mxu1 }
 0x140   :  { %v332_v24 = vadd.f32 %v331_v23, %v120_v21  ;;  %v333_v25 = vpop.f32.mrb[1].mxu1  ;;  %v451_v21 = vld [vmem:[%s1642_s4] sm:$0x3] }
 0x141   :  { %v334_v26 = vadd.f32 %v333_v25, %v124_v22  ;;  %v335_v27 = vpop.f32.mrb[2].mxu1  ;;  %v456_v22 = vrot.slane %v451_v21, %v119_v18  ;;  %v460_v23 = vrot.slane %v451_v21, %v123_v20  ;;  %v1158_v18 = vld [vmem:[%s1644_s6] ss:$0 sm:$0xff] }
 0x142   :  { %v379_v28 = vmax.f32 %v332_v24, 0.0  ;;  %v336_v29 = vpop.f32.mrb[3].mxu1 }
 0x143   :  { %v380_v30 = vmax.f32 %v334_v26, 0.0 }
 0x144   :  { %v383_v33 = vpack.c.bf16 %v379_v28, %v379_v28 }
 0x145   :  { %v384_v31 = vpack.c.bf16 %v380_v30, %v380_v30 }
 0x147   :  { %815 = vmatprep.mubr.bf16.mxu0 %v384_v31 }
 0x148   :  { %816 = vmatmul.mubr.bf16.vlgmr.msra.gmra.mrb[0].mxu0 %v383_v33 }
 0x149   :  { %825 = vmatpush1.bf16.msra.mxu0 %v1311_v32 }
 0x14a   :  { %826 = vmatprep.subr.bf16.mxu0 %v1316_v34 }
 0x14d   :  { %827 = vmatpush1.bf16.msra.mxu0 %v1314_v35 }
 0x14e   :  { %828 = vmatprep.subr.bf16.mxu0 %v1319_v36 }
 0x151   :  { %829 = vmatpush1.bf16.msra.mxu0 %v1317_v37 }
 0x152   :  { %830 = vmatprep.subr.bf16.mxu0 %v1322_v38 }
 0x155   :  { %831 = vmatpush1.bf16.msra.mxu0 %v1320_v39 }
 0x156   :  { %832 = vmatprep.subr.bf16.mxu0 %v1325_v40 }
 0x159   :  { %833 = vmatpush1.bf16.msra.mxu0 %v1323_v41 }
 0x15a   :  { %834 = vmatprep.subr.bf16.mxu0 %v1328_v42 }
 0x15d   :  { %835 = vmatpush1.bf16.msra.mxu0 %v1326_v43 }
 0x15e   :  { %836 = vmatprep.subr.bf16.mxu0 %v1331_v45 }
 0x15f   :  { %v372_v49 = vpop.f32.mrb[4].mxu1 }
 0x160   :  { %v374_v50 = vpop.f32.mrb[5].mxu1  ;;  %v373_v9 = vadd.f32 %v372_v49, %v128_v6 }
 0x161   :  { %837 = vmatpush1.bf16.msra.mxu0 %v1329_v46  ;;  %v375_v52 = vadd.f32 %v374_v50, %v132_v47  ;;  %v376_v53 = vpop.f32.mrb[6].mxu1 }
 0x162   :  { %838 = vmatprep.subr.bf16.mxu0 %v1334_v48  ;;  %v377_v55 = vpop.f32.mrb[7].mxu1  ;;  %v381_v12 = vmax.f32 %v373_v9, 0.0 }
 0x163   :  { %v382_v56 = vmax.f32 %v375_v52, 0.0 }
 0x164   :  { %v385_v13 = vpack.c.bf16 %v381_v12, %v381_v12 }
 0x165   :  { %839 = vmatpush1.bf16.msra.mxu0 %v1332_v51  ;;  %v386_v58 = vpack.c.bf16 %v382_v56, %v382_v56 }
 0x166   :  { %840 = vmatprep.subr.bf16.mxu0 %v1337_v54 }
 0x167   :  { %856 = vmatprep.mubr.bf16.mxu0 %v386_v58 }
 0x169   :  { %841 = vmatpush1.bf16.msra.mxu0 %v1335_v57 }
 0x16a   :  { %842 = vmatprep.subr.bf16.mxu0 %v1340_v59 }
 0x16d   :  { %843 = vmatpush1.bf16.msra.mxu0 %v1338_v60 }
 0x16e   :  { %844 = vmatprep.subr.bf16.mxu0 %v1343_v61 }
 0x171   :  { %845 = vmatpush1.bf16.msra.mxu0 %v1341_v62 }
 0x172   :  { %846 = vmatprep.subr.bf16.mxu0 %v1346_v63 }
 0x175   :  { %847 = vmatpush1.bf16.msra.mxu0 %v1344_v0 }
 0x176   :  { %848 = vmatprep.subr.bf16.mxu0 %v1349_v1 }
 0x179   :  { %849 = vmatpush1.bf16.msra.mxu0 %v1347_v2 }
 0x17a   :  { %850 = vmatprep.subr.bf16.mxu0 %v1352_v4 }
 0x17d   :  { %851 = vmatpush1.bf16.msra.mxu0 %v1350_v5 }
 0x17e   :  { %852 = vmatprep.subr.bf16.mxu0 %v1355_v7 }
 0x181   :  { %853 = vmatpush1.bf16.msra.mxu0 %v1353_v8 }
 0x182   :  { %854 = vmatprep.subr.bf16.mxu0 %v1358_v10 }
 0x185   :  { %855 = vmatpush1.bf16.msra.mxu0 %v1356_v11 }
 0x188   :  { %857 = vmatmul.mubr.bf16.vlgmr.msra.gmra.mrb[0].mxu0 %v385_v13 }
 0x25b   :  { %v858_v24 = vpop.f32.mrb[0].mxu0 }
 0x25c   :  { %v1197_v25 = vadd.f32 %v858_v24, %v456_v22  ;;  %v860_v26 = vpop.f32.mrb[1].mxu0 }
 0x25d   :  { %v1198_v27 = vadd.f32 %v860_v26, %v460_v23  ;;  %v862_v28 = vpop.f32.mrb[2].mxu0 }
 0x25e   :  { %v865_v29 = vmax.f32 %v1197_v25, 0.0  ;;  %v863_v30 = vpop.f32.mrb[3].mxu0 }
 0x25f   :  { %v866_v31 = vmax.f32 %v1198_v27, 0.0 }
 0x260   :  { %v867_v33 = vpack.c.bf16 %v865_v29, %v865_v29 }
 0x261   :  { %v868_v32 = vpack.c.bf16 %v866_v31, %v866_v31 }
 0x263   :  { %1036 = vmatprep.mubr.bf16.mxu1 %v868_v32 }
 0x264   :  { %1037 = vmatmul.mubr.bf16.vlgmr.msra.gmra.mrb[8].mxu1 %v867_v33 }
 0x337   :  { %v1191_v34 = vpop.f32.mrb[8].mxu1 }
 0x338   :  { %v1192_v35 = vpop.f32.mrb[9].mxu1 }
 0x339   :  { %v1193_v17 = vadd.f32 %v1192_v35, %v1191_v34  ;;  %v1194_v20 = vpop.f32.mrb[10].mxu1 }
 0x33a   :  { %v1195_v36 = vpop.f32.mrb[11].mxu1 }
 0x33b   :  { %v1039_v37 = vadd.f32 %v1193_v17, %v1158_v18 }
 0x33d   :  { %1044 = vst [vmem:[#allocation10] sm:$0xff] %v1039_v37 }
 0x33e   :  { %1474 = shalt.err (!%p1471_p8)
}
 0x33f   :  { %s1475_s6 = scalar_lea.hbm %s1645_s7, 128 }
 0x340   :  { %p1476_p9 = scmp.ne.s32.totalorder %s1645_s7, %s1475_s6  ;;  %p1479_p10 = scmp.lt.u32.totalorder %s1475_s6, %s1645_s7 }
 0x342   :  { %p1481_p11 = pnand %p1479_p10, %p1476_p9 }
 0x344   :  { %1484 = shalt.err (!%p1481_p11)
}
 0x345   :  { %1054 = dma.vmem_to_hbm [thread:$0]  %s1052_s9, 128, %s1645_s7, [#allocation4]  }
 0x346   :  { %1491 = dma.done.wait [#allocation4], 128  }
 0x347   :  { %1492 = vsyncadd [#allocation4], 4294967168 }
 0x348   :  { %1058 = vsyncpa [#allocation3], 1 }
 0x349   :  { %1059 = vsyncpa [#allocation6], 1 }
 0x34a   :  { %1060 = vsyncpa [#allocation9], 1 }
 0x34b   :  { %1061 = vsyncpa [#allocation4], 1 }

</bundles_post_ra>
